<compile_context>
chip_gen: v5e
topology: v5e:2x2
jax: 0.10.0
libtpu: 0.0.40
codegen_flags: <defaults>
</compile_context>

<pallas_src>
import functools

import jax
import jax.numpy as jnp
from jax.experimental import pallas as pl
from jax.experimental.pallas import tpu as pltpu

EPS = 1e-5  # PyTorch InstanceNorm2d default (affine=False, biased variance)


# ---------------------------------------------------------------------------
# Fused chain of stride-1 ConvINRelu layers (single pallas_call).
# ---------------------------------------------------------------------------
def _make_fused_kernel(B, C0, C, H, W):
    """Kernel for B stride-1 layers: layer0 C0->C, layers 1..B-1 C->C."""
    Wp = W + 2
    L = H * Wp                      # dense padded-width output length
    Qp = (H + 2) * Wp + 2           # flattened padded input (+2 so taps fit)
    offsets = tuple(kh * Wp + kw for kh in range(3) for kw in range(3))
    inv_n = 1.0 / float(H * W)
    shift = Wp + 1                  # dense layout -> next layer's padded layout

    def norm_relu(acc, mask):
        # InstanceNorm (masked single-pass stats, clamped var) + ReLU.
        ym = acc * mask
        mean = jnp.sum(ym, axis=1, keepdims=True) * inv_n
        ex2 = jnp.sum(ym * ym, axis=1, keepdims=True) * inv_n
        var = jnp.maximum(ex2 - mean * mean, 0.0)
        return jnp.maximum((acc - mean) * jax.lax.rsqrt(var + EPS), 0.0)

    def im2col(src, col_ref, c):
        # Build the (9*c, L) im2col slab: each unaligned tap shift done once.
        for t, d in enumerate(offsets):
            col_ref[t * c:(t + 1) * c, :] = src[:, d:d + L]

    def make_mask():
        col = jax.lax.broadcasted_iota(jnp.int32, (1, L), 1) % Wp
        return (col < W).astype(jnp.float32)

    if B == 1:
        def kernel(x_ref, w0_ref, o_ref, col0_ref):
            mask = make_mask()
            im2col(x_ref[0], col0_ref, C0)
            acc = jnp.dot(w0_ref[...], col0_ref[...],
                          preferred_element_type=jnp.float32)      # (C, L)
            o_ref[0] = norm_relu(acc, mask)
    else:
        def kernel(x_ref, w0_ref, wr_ref, o_ref, col0_ref, col_ref, pad_ref):
            mask = make_mask()
            # ---- layer 0: fused im2col + one K=9*C0 MXU matmul ----
            im2col(x_ref[0], col0_ref, C0)
            acc = jnp.dot(w0_ref[...], col0_ref[...],
                          preferred_element_type=jnp.float32)      # (C, L)
            y = norm_relu(acc, mask)
            # ---- layers 1..B-1: re-pad in VMEM, im2col, matmul, norm ----
            pad_ref[...] = jnp.zeros_like(pad_ref)
            for b in range(1, B):
                # mask garbage columns, then the Wp+1 shift is exactly the
                # zero-padded flattened layout of this layer's output.
                pad_ref[:, shift:shift + L] = y * mask
                im2col(pad_ref, col_ref, C)
                acc = jnp.dot(wr_ref[b - 1], col_ref[...],
                              preferred_element_type=jnp.float32)
                y = norm_relu(acc, mask)
            o_ref[0] = y

    return kernel, Qp, L


def _conv_chain_fused(x, weights):
    """All stride-1 ConvINRelu layers fused into one pallas_call."""
    N, C0, H, W = x.shape
    B = len(weights)
    C = weights[0].shape[0]
    Wp = W + 2
    kernel, Qp, L = _make_fused_kernel(B, C0, C, H, W)

    # Host glue: pad + flatten the input once; reshape weights tap-major.
    xf = jnp.pad(x, ((0, 0), (0, 0), (1, 1), (1, 1))).reshape(N, C0, (H + 2) * Wp)
    xf = jnp.pad(xf, ((0, 0), (0, 0), (0, 2)))                     # (N, C0, Qp)
    # (C, C_in, 3, 3) -> (C, 9*C_in), K index = (kh*3+kw)*C_in + ci
    w0 = jnp.transpose(weights[0], (0, 2, 3, 1)).reshape(C, 9 * C0)

    args = [xf, w0]
    in_specs = [pl.BlockSpec((1, C0, Qp), lambda n: (n, 0, 0)),
                pl.BlockSpec((C, 9 * C0), lambda n: (0, 0))]
    scratch = [pltpu.VMEM((9 * C0, L), jnp.float32)]               # im2col L0
    if B > 1:
        wr = jnp.stack([jnp.transpose(w, (0, 2, 3, 1)).reshape(C, 9 * C)
                        for w in weights[1:]])                     # (B-1, C, 9C)
        args.append(wr)
        in_specs.append(pl.BlockSpec((B - 1, C, 9 * C), lambda n: (0, 0, 0)))
        scratch += [pltpu.VMEM((9 * C, L), jnp.float32),           # im2col L>=1
                    pltpu.VMEM((C, Qp), jnp.float32)]              # re-pad slab

    out = pl.pallas_call(
        kernel,
        out_shape=jax.ShapeDtypeStruct((N, C, L), jnp.float32),
        grid_spec=pltpu.PrefetchScalarGridSpec(
            num_scalar_prefetch=0,
            grid=(N,),
            in_specs=in_specs,
            out_specs=pl.BlockSpec((1, C, L), lambda n: (n, 0, 0)),
            scratch_shapes=scratch),
        compiler_params=pltpu.CompilerParams(
            dimension_semantics=("parallel",)),
    )(*args)

    # Lane-dense (N, C, H*Wp) -> NCHW: free reshape + one cheap slice at the
    # very end of the whole block (no per-layer glue anymore).
    return out.reshape(N, C, H, Wp)[:, :, :, :W]


# ---------------------------------------------------------------------------
# Standalone strided first layer (only used when stride > 1).
# ---------------------------------------------------------------------------
def _conv_in_relu_strided(x, weight, stride):
    N, C_in, H, W = x.shape
    C_out = weight.shape[0]
    s = int(stride)
    Wp = W + 2
    L = H * Wp
    Qp = (H + 2) * Wp + 2
    H_out = (H - 1) // s + 1
    W_out = (W - 1) // s + 1
    offsets = tuple(kh * Wp + kw for kh in range(3) for kw in range(3))
    inv_n = 1.0 / float(H_out * W_out)

    def kernel(x_ref, w_ref, o_ref, col_ref):
        q = jax.lax.broadcasted_iota(jnp.int32, (1, L), 1)
        r, c = q // Wp, q % Wp
        mask = ((c < W) & (r % s == 0) & (c % s == 0)).astype(jnp.float32)
        xv = x_ref[0]
        for t, d in enumerate(offsets):
            col_ref[t * C_in:(t + 1) * C_in, :] = xv[:, d:d + L]
        acc = jnp.dot(w_ref[...], col_ref[...],
                      preferred_element_type=jnp.float32)          # (C_out, L)
        ym = acc * mask
        mean = jnp.sum(ym, axis=1, keepdims=True) * inv_n
        ex2 = jnp.sum(ym * ym, axis=1, keepdims=True) * inv_n
        var = jnp.maximum(ex2 - mean * mean, 0.0)
        o_ref[0] = jnp.maximum((acc - mean) * jax.lax.rsqrt(var + EPS), 0.0)

    xf = jnp.pad(x, ((0, 0), (0, 0), (1, 1), (1, 1))).reshape(N, C_in, (H + 2) * Wp)
    xf = jnp.pad(xf, ((0, 0), (0, 0), (0, 2)))
    wt = jnp.transpose(weight, (0, 2, 3, 1)).reshape(C_out, 9 * C_in)

    out = pl.pallas_call(
        kernel,
        out_shape=jax.ShapeDtypeStruct((N, C_out, L), jnp.float32),
        grid_spec=pltpu.PrefetchScalarGridSpec(
            num_scalar_prefetch=0,
            grid=(N,),
            in_specs=[pl.BlockSpec((1, C_in, Qp), lambda n: (n, 0, 0)),
                      pl.BlockSpec((C_out, 9 * C_in), lambda n: (0, 0))],
            out_specs=pl.BlockSpec((1, C_out, L), lambda n: (n, 0, 0)),
            scratch_shapes=[pltpu.VMEM((9 * C_in, L), jnp.float32)]),
        compiler_params=pltpu.CompilerParams(
            dimension_semantics=("parallel",)),
    )(xf, wt)
    # Stats were computed only over the kept (strided) positions, so this
    # reshape + strided slice matches Conv2d(stride=s) + InstanceNorm2d.
    return out.reshape(N, C_out, H, Wp)[:, :, ::s, :W:s]


# ---------------------------------------------------------------------------
# ConvBlock.forward
# ---------------------------------------------------------------------------
@functools.partial(jax.jit, static_argnums=(2,))
def conv_block(x, weights, stride=1):
    """ConvBlock.forward: chain of ConvINRelu layers (first uses `stride`)."""
    weights = tuple(weights)
    if not weights:
        return x
    if stride != 1:
        x = _conv_in_relu_strided(x, weights[0], stride)
        weights = weights[1:]
    if weights:
        x = _conv_chain_fused(x, weights)
    return x


# ---------------------------------------------------------------------------
# Pure-JAX reference (keeps the conv bias; InstanceNorm cancels it exactly).
# ---------------------------------------------------------------------------
def _reference_layer(x, weight, bias, stride):
    y = jax.lax.conv_general_dilated(
        x, weight, window_strides=(stride, stride), padding=((1, 1), (1, 1)),
        dimension_numbers=("NCHW", "OIHW", "NCHW"))
    y = y + bias[None, :, None, None]
    mean = y.mean(axis=(2, 3), keepdims=True)
    var = ((y - mean) ** 2).mean(axis=(2, 3), keepdims=True)
    return jnp.maximum((y - mean) / jnp.sqrt(var + EPS), 0.0)


if __name__ == "__main__":
    # ConvBlock(in_channels=4, out_channels=8, blocks=2)
    N, C_in, H, W = 2, 4, 16, 16
    C_out, blocks = 8, 2

    key = jax.random.PRNGKey(0)
    keys = jax.random.split(key, 1 + 2 * blocks)
    x = jax.random.normal(keys[0], (N, C_in, H, W), dtype=jnp.float32)

    weights, biases = [], []
    c_prev = C_in
    for b in range(blocks):
        weights.append(0.1 * jax.random.normal(
            keys[1 + 2 * b], (C_out, c_prev, 3, 3), dtype=jnp.float32))
        biases.append(0.1 * jax.random.normal(
            keys[2 + 2 * b], (C_out,), dtype=jnp.float32))
        c_prev = C_out

    # stride=1 exercises the fully-fused path; stride=2 also exercises the
    # standalone strided first-layer kernel followed by a 1-layer fused chain.
    for stride in (1, 2):
        out = jax.block_until_ready(conv_block(x, tuple(weights), stride))
        ref = x
        for b in range(blocks):
            ref = _reference_layer(ref, weights[b], biases[b],
                                   stride if b == 0 else 1)
        assert out.shape == ref.shape, (stride, out.shape, ref.shape)
        assert jnp.allclose(out, ref, rtol=1e-4, atol=1e-4), \
            f"mismatch vs reference (stride={stride})"

    print("KERNEL_OK")
</pallas_src>

<mosaic_0001>
module attributes {stable_mosaic.version = 11 : i64} {
  func.func @kernel(%arg0: i32, %arg1: memref<1x4x326xf32, #tpu.memory_space<vmem>>, %arg2: memref<8x36xf32, #tpu.memory_space<vmem>>, %arg3: memref<1x8x72xf32, #tpu.memory_space<vmem>>, %arg4: memref<1x8x288xf32, #tpu.memory_space<vmem>>, %arg5: memref<36x288xf32, #tpu.memory_space<vmem>>, %arg6: memref<72x288xf32, #tpu.memory_space<vmem>>, %arg7: memref<8x326xf32, #tpu.memory_space<vmem>>) attributes {dimension_semantics = [#tpu.dimension_semantics<parallel>], iteration_bounds = array<i64: 2>, scalar_prefetch = 0 : i64, scratch_operands = 3 : i64, tpu.core_type = #tpu.core_type<tc>, window_params = [{transform_indices = @transform_0, window_bounds = array<i64: 1, 4, 326>}, {pipeline_mode = #tpu.pipeline_mode<synchronous>, transform_indices = @transform_1, window_bounds = array<i64: 8, 36>}, {pipeline_mode = #tpu.pipeline_mode<synchronous>, transform_indices = @transform_2, window_bounds = array<i64: 1, 8, 72>}, {transform_indices = @transform_3, window_bounds = array<i64: 1, 8, 288>}]} {
    %0 = tpu.iota {dimensions = array<i32: 1>} : vector<1x288xi32>
    %c18_i32 = arith.constant 18 : i32
    %c0_i32 = arith.constant 0 : i32
    %1 = arith.cmpi eq, %c18_i32, %c0_i32 : i32
    %c1_i32 = arith.constant 1 : i32
    %2 = arith.select %1, %c1_i32, %c18_i32 : i32
    %3 = vector.broadcast %2 : i32 to vector<1x288xi32>
    %4 = arith.remsi %0, %3 : vector<1x288xi32>
    %c0_i32_0 = arith.constant 0 : i32
    %5 = vector.broadcast %c0_i32_0 : i32 to vector<1x288xi32>
    %6 = arith.cmpi ne, %4, %5 : vector<1x288xi32>
    %c0_i32_1 = arith.constant 0 : i32
    %7 = vector.broadcast %c0_i32_1 : i32 to vector<1x288xi32>
    %8 = arith.cmpi slt, %4, %7 : vector<1x288xi32>
    %c0_i32_2 = arith.constant 0 : i32
    %9 = arith.cmpi slt, %2, %c0_i32_2 : i32
    %10 = vector.broadcast %9 : i1 to vector<1x288xi1>
    %11 = vector.broadcast %10 : vector<1x288xi1> to vector<1x288xi1>
    %12 = arith.xori %8, %11 : vector<1x288xi1>
    %13 = arith.andi %12, %6 : vector<1x288xi1>
    %14 = vector.broadcast %2 : i32 to vector<1x288xi32>
    %15 = arith.addi %4, %14 : vector<1x288xi32>
    %16 = arith.select %13, %15, %4 : vector<1x288xi1>, vector<1x288xi32>
    %c16_i32 = arith.constant 16 : i32
    %17 = vector.broadcast %c16_i32 : i32 to vector<1x288xi32>
    %18 = arith.cmpi slt, %16, %17 : vector<1x288xi32>
    %19 = arith.extui %18 : vector<1x288xi1> to vector<1x288xi32>
    %20 = arith.sitofp %19 : vector<1x288xi32> to vector<1x288xf32>
    %c0 = arith.constant 0 : index
    %c0_3 = arith.constant 0 : index
    %c0_4 = arith.constant 0 : index
    %21 = vector.load %arg1[%c0, %c0_3, %c0_4] : memref<1x4x326xf32, #tpu.memory_space<vmem>>, vector<1x4x326xf32>
    %22 = vector.shape_cast %21 : vector<1x4x326xf32> to vector<4x326xf32>
    %23 = vector.extract_strided_slice %22 {offsets = [0, 0], sizes = [4, 288], strides = [1, 1]} : vector<4x326xf32> to vector<4x288xf32>
    %c0_5 = arith.constant 0 : index
    %c0_6 = arith.constant 0 : index
    %24 = vector.load %arg5[%c0_5, %c0_6] : memref<36x288xf32, #tpu.memory_space<vmem>>, vector<4x288xf32>
    tpu.vector_store %arg5[%c0_5, %c0_6], %23 {strides = array<i32>} : memref<36x288xf32, #tpu.memory_space<vmem>>, vector<4x288xf32>,
    %25 = vector.extract_strided_slice %22 {offsets = [0, 1], sizes = [4, 288], strides = [1, 1]} : vector<4x326xf32> to vector<4x288xf32>
    %c4 = arith.constant 4 : index
    %c0_7 = arith.constant 0 : index
    %26 = vector.load %arg5[%c4, %c0_7] : memref<36x288xf32, #tpu.memory_space<vmem>>, vector<4x288xf32>
    tpu.vector_store %arg5[%c4, %c0_7], %25 {strides = array<i32>} : memref<36x288xf32, #tpu.memory_space<vmem>>, vector<4x288xf32>,
    %27 = vector.extract_strided_slice %22 {offsets = [0, 2], sizes = [4, 288], strides = [1, 1]} : vector<4x326xf32> to vector<4x288xf32>
    %c8 = arith.constant 8 : index
    %c0_8 = arith.constant 0 : index
    %28 = vector.load %arg5[%c8, %c0_8] : memref<36x288xf32, #tpu.memory_space<vmem>>, vector<4x288xf32>
    tpu.vector_store %arg5[%c8, %c0_8], %27 {strides = array<i32>} : memref<36x288xf32, #tpu.memory_space<vmem>>, vector<4x288xf32>,
    %29 = vector.extract_strided_slice %22 {offsets = [0, 18], sizes = [4, 288], strides = [1, 1]} : vector<4x326xf32> to vector<4x288xf32>
    %c12 = arith.constant 12 : index
    %c0_9 = arith.constant 0 : index
    %30 = vector.load %arg5[%c12, %c0_9] : memref<36x288xf32, #tpu.memory_space<vmem>>, vector<4x288xf32>
    tpu.vector_store %arg5[%c12, %c0_9], %29 {strides = array<i32>} : memref<36x288xf32, #tpu.memory_space<vmem>>, vector<4x288xf32>,
    %31 = vector.extract_strided_slice %22 {offsets = [0, 19], sizes = [4, 288], strides = [1, 1]} : vector<4x326xf32> to vector<4x288xf32>
    %c16 = arith.constant 16 : index
    %c0_10 = arith.constant 0 : index
    %32 = vector.load %arg5[%c16, %c0_10] : memref<36x288xf32, #tpu.memory_space<vmem>>, vector<4x288xf32>
    tpu.vector_store %arg5[%c16, %c0_10], %31 {strides = array<i32>} : memref<36x288xf32, #tpu.memory_space<vmem>>, vector<4x288xf32>,
    %33 = vector.extract_strided_slice %22 {offsets = [0, 20], sizes = [4, 288], strides = [1, 1]} : vector<4x326xf32> to vector<4x288xf32>
    %c20 = arith.constant 20 : index
    %c0_11 = arith.constant 0 : index
    %34 = vector.load %arg5[%c20, %c0_11] : memref<36x288xf32, #tpu.memory_space<vmem>>, vector<4x288xf32>
    tpu.vector_store %arg5[%c20, %c0_11], %33 {strides = array<i32>} : memref<36x288xf32, #tpu.memory_space<vmem>>, vector<4x288xf32>,
    %35 = vector.extract_strided_slice %22 {offsets = [0, 36], sizes = [4, 288], strides = [1, 1]} : vector<4x326xf32> to vector<4x288xf32>
    %c24 = arith.constant 24 : index
    %c0_12 = arith.constant 0 : index
    %36 = vector.load %arg5[%c24, %c0_12] : memref<36x288xf32, #tpu.memory_space<vmem>>, vector<4x288xf32>
    tpu.vector_store %arg5[%c24, %c0_12], %35 {strides = array<i32>} : memref<36x288xf32, #tpu.memory_space<vmem>>, vector<4x288xf32>,
    %37 = vector.extract_strided_slice %22 {offsets = [0, 37], sizes = [4, 288], strides = [1, 1]} : vector<4x326xf32> to vector<4x288xf32>
    %c28 = arith.constant 28 : index
    %c0_13 = arith.constant 0 : index
    %38 = vector.load %arg5[%c28, %c0_13] : memref<36x288xf32, #tpu.memory_space<vmem>>, vector<4x288xf32>
    tpu.vector_store %arg5[%c28, %c0_13], %37 {strides = array<i32>} : memref<36x288xf32, #tpu.memory_space<vmem>>, vector<4x288xf32>,
    %39 = vector.extract_strided_slice %22 {offsets = [0, 38], sizes = [4, 288], strides = [1, 1]} : vector<4x326xf32> to vector<4x288xf32>
    %c32 = arith.constant 32 : index
    %c0_14 = arith.constant 0 : index
    %40 = vector.load %arg5[%c32, %c0_14] : memref<36x288xf32, #tpu.memory_space<vmem>>, vector<4x288xf32>
    tpu.vector_store %arg5[%c32, %c0_14], %39 {strides = array<i32>} : memref<36x288xf32, #tpu.memory_space<vmem>>, vector<4x288xf32>,
    %c0_15 = arith.constant 0 : index
    %c0_16 = arith.constant 0 : index
    %41 = vector.load %arg2[%c0_15, %c0_16] : memref<8x36xf32, #tpu.memory_space<vmem>>, vector<8x36xf32>
    %c0_17 = arith.constant 0 : index
    %c0_18 = arith.constant 0 : index
    %42 = vector.load %arg5[%c0_17, %c0_18] : memref<36x288xf32, #tpu.memory_space<vmem>>, vector<36x288xf32>
    %cst = arith.constant dense<0.000000e+00> : vector<8x288xf32>
    %43 = tpu.matmul %41, %42, %cst {dimension_numbers = #tpu.dot_dimension_numbers<[1], [0], [0], [1], [0, 0, 1, 1], [], []>} : vector<8x36xf32>, vector<36x288xf32>, vector<8x288xf32> -> vector<8x288xf32>
    %44 = vector.broadcast %20 : vector<1x288xf32> to vector<8x288xf32>
    %45 = arith.mulf %43, %44 : vector<8x288xf32>
    %cst_19 = arith.constant dense<0.000000e+00> : vector<8xf32>
    %46 = vector.multi_reduction <add>, %45, %cst_19 [1] : vector<8x288xf32> to vector<8xf32>
    %47 = vector.shape_cast %46 : vector<8xf32> to vector<8x1xf32>
    %cst_20 = arith.constant 3.906250e-03 : f32
    %48 = vector.broadcast %cst_20 : f32 to vector<8x1xf32>
    %49 = arith.mulf %47, %48 : vector<8x1xf32>
    %50 = arith.mulf %45, %45 : vector<8x288xf32>
    %cst_21 = arith.constant dense<0.000000e+00> : vector<8xf32>
    %51 = vector.multi_reduction <add>, %50, %cst_21 [1] : vector<8x288xf32> to vector<8xf32>
    %52 = vector.shape_cast %51 : vector<8xf32> to vector<8x1xf32>
    %cst_22 = arith.constant 3.906250e-03 : f32
    %53 = vector.broadcast %cst_22 : f32 to vector<8x1xf32>
    %54 = arith.mulf %52, %53 : vector<8x1xf32>
    %55 = arith.mulf %49, %49 : vector<8x1xf32>
    %56 = arith.subf %54, %55 : vector<8x1xf32>
    %cst_23 = arith.constant 0.000000e+00 : f32
    %57 = vector.broadcast %cst_23 : f32 to vector<8x1xf32>
    %58 = arith.maximumf %56, %57 : vector<8x1xf32>
    %59 = vector.broadcast %49 : vector<8x1xf32> to vector<8x288xf32>
    %60 = arith.subf %43, %59 : vector<8x288xf32>
    %cst_24 = arith.constant 9.99999974E-6 : f32
    %61 = vector.broadcast %cst_24 : f32 to vector<8x1xf32>
    %62 = arith.addf %58, %61 : vector<8x1xf32>
    %63 = math.rsqrt %62 : vector<8x1xf32>
    %64 = vector.broadcast %63 : vector<8x1xf32> to vector<8x288xf32>
    %65 = arith.mulf %60, %64 : vector<8x288xf32>
    %cst_25 = arith.constant 0.000000e+00 : f32
    %66 = vector.broadcast %cst_25 : f32 to vector<8x288xf32>
    %67 = arith.maximumf %65, %66 : vector<8x288xf32>
    %cst_26 = arith.constant 0.000000e+00 : f32
    %68 = vector.broadcast %cst_26 : f32 to vector<8x326xf32>
    %c0_27 = arith.constant 0 : index
    %c0_28 = arith.constant 0 : index
    %69 = vector.load %arg7[%c0_27, %c0_28] : memref<8x326xf32, #tpu.memory_space<vmem>>, vector<8x326xf32>
    tpu.vector_store %arg7[%c0_27, %c0_28], %68 {strides = array<i32>} : memref<8x326xf32, #tpu.memory_space<vmem>>, vector<8x326xf32>,
    %70 = vector.broadcast %20 : vector<1x288xf32> to vector<8x288xf32>
    %71 = arith.mulf %67, %70 : vector<8x288xf32>
    %c0_29 = arith.constant 0 : index
    %c19 = arith.constant 19 : index
    %72 = vector.load %arg7[%c0_29, %c19] : memref<8x326xf32, #tpu.memory_space<vmem>>, vector<8x288xf32>
    tpu.vector_store %arg7[%c0_29, %c19], %71 {strides = array<i32>} : memref<8x326xf32, #tpu.memory_space<vmem>>, vector<8x288xf32>,
    %c0_30 = arith.constant 0 : index
    %c0_31 = arith.constant 0 : index
    %73 = vector.load %arg7[%c0_30, %c0_31] : memref<8x326xf32, #tpu.memory_space<vmem>>, vector<8x288xf32>
    %c0_32 = arith.constant 0 : index
    %c0_33 = arith.constant 0 : index
    %74 = vector.load %arg6[%c0_32, %c0_33] : memref<72x288xf32, #tpu.memory_space<vmem>>, vector<8x288xf32>
    tpu.vector_store %arg6[%c0_32, %c0_33], %73 {strides = array<i32>} : memref<72x288xf32, #tpu.memory_space<vmem>>, vector<8x288xf32>,
    %c0_34 = arith.constant 0 : index
    %c1 = arith.constant 1 : index
    %75 = vector.load %arg7[%c0_34, %c1] : memref<8x326xf32, #tpu.memory_space<vmem>>, vector<8x288xf32>
    %c8_35 = arith.constant 8 : index
    %c0_36 = arith.constant 0 : index
    %76 = vector.load %arg6[%c8_35, %c0_36] : memref<72x288xf32, #tpu.memory_space<vmem>>, vector<8x288xf32>
    tpu.vector_store %arg6[%c8_35, %c0_36], %75 {strides = array<i32>} : memref<72x288xf32, #tpu.memory_space<vmem>>, vector<8x288xf32>,
    %c0_37 = arith.constant 0 : index
    %c2 = arith.constant 2 : index
    %77 = vector.load %arg7[%c0_37, %c2] : memref<8x326xf32, #tpu.memory_space<vmem>>, vector<8x288xf32>
    %c16_38 = arith.constant 16 : index
    %c0_39 = arith.constant 0 : index
    %78 = vector.load %arg6[%c16_38, %c0_39] : memref<72x288xf32, #tpu.memory_space<vmem>>, vector<8x288xf32>
    tpu.vector_store %arg6[%c16_38, %c0_39], %77 {strides = array<i32>} : memref<72x288xf32, #tpu.memory_space<vmem>>, vector<8x288xf32>,
    %c0_40 = arith.constant 0 : index
    %c18 = arith.constant 18 : index
    %79 = vector.load %arg7[%c0_40, %c18] : memref<8x326xf32, #tpu.memory_space<vmem>>, vector<8x288xf32>
    %c24_41 = arith.constant 24 : index
    %c0_42 = arith.constant 0 : index
    %80 = vector.load %arg6[%c24_41, %c0_42] : memref<72x288xf32, #tpu.memory_space<vmem>>, vector<8x288xf32>
    tpu.vector_store %arg6[%c24_41, %c0_42], %79 {strides = array<i32>} : memref<72x288xf32, #tpu.memory_space<vmem>>, vector<8x288xf32>,
    %c0_43 = arith.constant 0 : index
    %c19_44 = arith.constant 19 : index
    %81 = vector.load %arg7[%c0_43, %c19_44] : memref<8x326xf32, #tpu.memory_space<vmem>>, vector<8x288xf32>
    %c32_45 = arith.constant 32 : index
    %c0_46 = arith.constant 0 : index
    %82 = vector.load %arg6[%c32_45, %c0_46] : memref<72x288xf32, #tpu.memory_space<vmem>>, vector<8x288xf32>
    tpu.vector_store %arg6[%c32_45, %c0_46], %81 {strides = array<i32>} : memref<72x288xf32, #tpu.memory_space<vmem>>, vector<8x288xf32>,
    %c0_47 = arith.constant 0 : index
    %c20_48 = arith.constant 20 : index
    %83 = vector.load %arg7[%c0_47, %c20_48] : memref<8x326xf32, #tpu.memory_space<vmem>>, vector<8x288xf32>
    %c40 = arith.constant 40 : index
    %c0_49 = arith.constant 0 : index
    %84 = vector.load %arg6[%c40, %c0_49] : memref<72x288xf32, #tpu.memory_space<vmem>>, vector<8x288xf32>
    tpu.vector_store %arg6[%c40, %c0_49], %83 {strides = array<i32>} : memref<72x288xf32, #tpu.memory_space<vmem>>, vector<8x288xf32>,
    %c0_50 = arith.constant 0 : index
    %c36 = arith.constant 36 : index
    %85 = vector.load %arg7[%c0_50, %c36] : memref<8x326xf32, #tpu.memory_space<vmem>>, vector<8x288xf32>
    %c48 = arith.constant 48 : index
    %c0_51 = arith.constant 0 : index
    %86 = vector.load %arg6[%c48, %c0_51] : memref<72x288xf32, #tpu.memory_space<vmem>>, vector<8x288xf32>
    tpu.vector_store %arg6[%c48, %c0_51], %85 {strides = array<i32>} : memref<72x288xf32, #tpu.memory_space<vmem>>, vector<8x288xf32>,
    %c0_52 = arith.constant 0 : index
    %c37 = arith.constant 37 : index
    %87 = vector.load %arg7[%c0_52, %c37] : memref<8x326xf32, #tpu.memory_space<vmem>>, vector<8x288xf32>
    %c56 = arith.constant 56 : index
    %c0_53 = arith.constant 0 : index
    %88 = vector.load %arg6[%c56, %c0_53] : memref<72x288xf32, #tpu.memory_space<vmem>>, vector<8x288xf32>
    tpu.vector_store %arg6[%c56, %c0_53], %87 {strides = array<i32>} : memref<72x288xf32, #tpu.memory_space<vmem>>, vector<8x288xf32>,
    %c0_54 = arith.constant 0 : index
    %c38 = arith.constant 38 : index
    %89 = vector.load %arg7[%c0_54, %c38] : memref<8x326xf32, #tpu.memory_space<vmem>>, vector<8x288xf32>
    %c64 = arith.constant 64 : index
    %c0_55 = arith.constant 0 : index
    %90 = vector.load %arg6[%c64, %c0_55] : memref<72x288xf32, #tpu.memory_space<vmem>>, vector<8x288xf32>
    tpu.vector_store %arg6[%c64, %c0_55], %89 {strides = array<i32>} : memref<72x288xf32, #tpu.memory_space<vmem>>, vector<8x288xf32>,
    %c0_56 = arith.constant 0 : index
    %c0_57 = arith.constant 0 : index
    %c0_58 = arith.constant 0 : index
    %91 = vector.load %arg3[%c0_56, %c0_57, %c0_58] : memref<1x8x72xf32, #tpu.memory_space<vmem>>, vector<1x8x72xf32>
    %92 = vector.shape_cast %91 : vector<1x8x72xf32> to vector<8x72xf32>
    %c0_59 = arith.constant 0 : index
    %c0_60 = arith.constant 0 : index
    %93 = vector.load %arg6[%c0_59, %c0_60] : memref<72x288xf32, #tpu.memory_space<vmem>>, vector<72x288xf32>
    %cst_61 = arith.constant dense<0.000000e+00> : vector<8x288xf32>
    %94 = tpu.matmul %92, %93, %cst_61 {dimension_numbers = #tpu.dot_dimension_numbers<[1], [0], [0], [1], [0, 0, 1, 1], [], []>} : vector<8x72xf32>, vector<72x288xf32>, vector<8x288xf32> -> vector<8x288xf32>
    %95 = vector.broadcast %20 : vector<1x288xf32> to vector<8x288xf32>
    %96 = arith.mulf %94, %95 : vector<8x288xf32>
    %cst_62 = arith.constant dense<0.000000e+00> : vector<8xf32>
    %97 = vector.multi_reduction <add>, %96, %cst_62 [1] : vector<8x288xf32> to vector<8xf32>
    %98 = vector.shape_cast %97 : vector<8xf32> to vector<8x1xf32>
    %cst_63 = arith.constant 3.906250e-03 : f32
    %99 = vector.broadcast %cst_63 : f32 to vector<8x1xf32>
    %100 = arith.mulf %98, %99 : vector<8x1xf32>
    %101 = arith.mulf %96, %96 : vector<8x288xf32>
    %cst_64 = arith.constant dense<0.000000e+00> : vector<8xf32>
    %102 = vector.multi_reduction <add>, %101, %cst_64 [1] : vector<8x288xf32> to vector<8xf32>
    %103 = vector.shape_cast %102 : vector<8xf32> to vector<8x1xf32>
    %cst_65 = arith.constant 3.906250e-03 : f32
    %104 = vector.broadcast %cst_65 : f32 to vector<8x1xf32>
    %105 = arith.mulf %103, %104 : vector<8x1xf32>
    %106 = arith.mulf %100, %100 : vector<8x1xf32>
    %107 = arith.subf %105, %106 : vector<8x1xf32>
    %cst_66 = arith.constant 0.000000e+00 : f32
    %108 = vector.broadcast %cst_66 : f32 to vector<8x1xf32>
    %109 = arith.maximumf %107, %108 : vector<8x1xf32>
    %110 = vector.broadcast %100 : vector<8x1xf32> to vector<8x288xf32>
    %111 = arith.subf %94, %110 : vector<8x288xf32>
    %cst_67 = arith.constant 9.99999974E-6 : f32
    %112 = vector.broadcast %cst_67 : f32 to vector<8x1xf32>
    %113 = arith.addf %109, %112 : vector<8x1xf32>
    %114 = math.rsqrt %113 : vector<8x1xf32>
    %115 = vector.broadcast %114 : vector<8x1xf32> to vector<8x288xf32>
    %116 = arith.mulf %111, %115 : vector<8x288xf32>
    %cst_68 = arith.constant 0.000000e+00 : f32
    %117 = vector.broadcast %cst_68 : f32 to vector<8x288xf32>
    %118 = arith.maximumf %116, %117 : vector<8x288xf32>
    %c0_69 = arith.constant 0 : index
    %c0_70 = arith.constant 0 : index
    %c0_71 = arith.constant 0 : index
    %119 = vector.load %arg4[%c0_69, %c0_70, %c0_71] : memref<1x8x288xf32, #tpu.memory_space<vmem>>, vector<1x8x288xf32>
    %120 = vector.shape_cast %119 : vector<1x8x288xf32> to vector<8x288xf32>
    %121 = vector.shape_cast %118 : vector<8x288xf32> to vector<1x8x288xf32>
    tpu.vector_store %arg4[%c0_69, %c0_70, %c0_71], %121 {strides = array<i32>} : memref<1x8x288xf32, #tpu.memory_space<vmem>>, vector<1x8x288xf32>,
    return
  }
  func.func @transform_0(%arg0: i32) -> (i32, i32, i32) {
    %c0_i32 = arith.constant 0 : i32
    %c0_i32_0 = arith.constant 0 : i32
    %c0_i32_1 = arith.constant 0 : i32
    return %arg0, %c0_i32, %c0_i32_0 : i32, i32, i32
  }
  func.func @transform_1(%arg0: i32) -> (i32, i32) {
    %c0_i32 = arith.constant 0 : i32
    %c0_i32_0 = arith.constant 0 : i32
    %c0_i32_1 = arith.constant 0 : i32
    return %c0_i32, %c0_i32_0 : i32, i32
  }
  func.func @transform_2(%arg0: i32) -> (i32, i32, i32) {
    %c0_i32 = arith.constant 0 : i32
    %c0_i32_0 = arith.constant 0 : i32
    %c0_i32_1 = arith.constant 0 : i32
    %c0_i32_2 = arith.constant 0 : i32
    return %c0_i32, %c0_i32_0, %c0_i32_1 : i32, i32, i32
  }
  func.func @transform_3(%arg0: i32) -> (i32, i32, i32) {
    %c0_i32 = arith.constant 0 : i32
    %c0_i32_0 = arith.constant 0 : i32
    %c0_i32_1 = arith.constant 0 : i32
    return %arg0, %c0_i32, %c0_i32_0 : i32, i32, i32
  }
}

</mosaic_0001>

<bundles_post_ra>
// kernel: conv_block.1
= control target key start
LH: loop header
LB: loop body
LE: loop exit
PB: predicated region body
PF: predicated region fallthrough
CT: control target
= control target key end

     0   :  { %s1077_s12 = smov 0   ;;  %s1277_s0 = inlined_call_operand.vmem [shape: f32[2,4,326], index: 0, kind: input, shape index: {}]   ;;  %s1278_s1 = inlined_call_operand.vmem [shape: f32[8,36], index: 1, kind: input, shape index: {}]   ;;  %s1279_s2 = inlined_call_operand.vmem [shape: f32[1,8,72], index: 2, kind: input, shape index: {}]   ;;  %s1280_s3 = inlined_call_operand.vmem [shape: f32[2,8,288], index: 3, kind: output, shape index: {}]  }
   0x1 LB: > { %s992_s13 = sadd.s32 4294967295, %s1044_s12   ;;  %p996_p0 = scmp.ge.s32.totalorder %s1044_s12, 1  ;;  %s1044_s12 = sphi %s1077_s12, %s13_s12  }
   0x2   : > { %p137_p1 = scmp.lt.s32.totalorder %s1044_s12, 3 }
   0x4   : > { %p138_p2 = pnand %p996_p0, %p137_p1 }
   0x5   : > { %p161_p3 = scmp.lt.s32.totalorder (!%p138_p2), %s992_s13, 1  ;;  %s1046_s18 = smov (!%p138_p2), 127  }
   0x6   : > { %141 = sbr.rel (%p138_p2) target bundleno = 1089 (0x441), region = 32  ;;  %s1047_s19 = smov (!%p138_p2), 126  }
   0x7   : > { %s1048_s20 = smov (!%p138_p2), 110   ;;  %s1049_s21 = smov (!%p138_p2), 109  }
   0x8   : > { %s1050_s22 = smov (!%p138_p2), 108   ;;  %s1051_s23 = smov (!%p138_p2), 92  }
   0x9   : > { %s1052_s24 = smov (!%p138_p2), 91   ;;  %s1053_s25 = smov (!%p138_p2), 90  }
   0xa   : > { %s1056_s28 = smov (!%p138_p2), 19  }
   0xb   : > { %s1291_s13 = smov (!%p161_p3, %s992_s13), 1  ;;  %vm301_vm0 = vcmask 257024   ;;  %vm1281_vm1 = vcmask 1039360   ;;  %vm1282_vm2 = vcmask 1031168   ;;  %vm1283_vm3 = vcmask 900096  }
   0xc   : > { %s1013_s14 = smul.u32 12, %s1291_s13  ;;  %vm381_vm4 = vcmask 891904   ;;  %vm403_vm5 = vcmask 883712   ;;  %vm446_vm6 = vcmask 744448   ;;  %vm324_vm7 = vcmask 261124  }
   0xd   : > { %vm424_vm8 = vcmask 752640   ;;  %vm467_vm9 = vcmask 736256   ;;  %v1054_v59 = vmov 0.0   ;;  %vm496_vm10 = vcmask 1043456   ;;  %s1014_s4 = smul.u32 24, %s1291_s13 }
   0xe   : > { %s165_s17 = scalar_lea.vmem %s1277_s0, %s1013_s14  ;;  %608 = vst [vmem:[#allocation4] sm:$0xff] %v1054_v59  ;;  %vm492_vm11 = vcmask 293888  }
   0xf   : > { %v286_v0 = vld [vmem:[%s165_s17] sm:$0xff]  ;;  %v287_v1 = vld [vmem:[%s165_s17 + $0x8] sm:$0xf]  ;;  %s170_s7 = scalar_lea.vmem %s1280_s3, %s1014_s4 }
  0x10   : > { %290 = vst [vmem:[#allocation1] ss:$2 sm:$0xff] %v286_v0 }
  0x11   : > { %292 = vst [vmem:[#allocation1 + $0x10] ss:$2 sm:$0xff] %v287_v1 }
  0x17   : > { %v293_v2 = vld.sshfl [vmem:[#allocation1] sm:$0xff pattern:$0x75316420]  ;;  %v294_v3 = vld.sshfl [vmem:[#allocation1 + $0x8] sm:$0xff pattern:$0x75316420] }
  0x18   : > { %304 = vst [vmem:[#allocation1 + $0x1] ss:$2 sm:$0xff] %v286_v0  ;;  %v1091_v4 = vld.sshfl [vmem:[#allocation1 + $0x10] sm:$0xff pattern:$0x75316420] }
  0x19   : > { %299 = vst [vmem:[#allocation2] sm:$0xf] %v293_v2 }
  0x1a   : > { %300 = vst [vmem:[#allocation2 + $0x8] sm:$0xf] %v294_v3 }
  0x1b   : > { %306 = vst [vmem:[#allocation1 + $0x11] ss:$2 sm:$0xff] %v287_v1 }
  0x1c   : > { %302 = vst.msk [vmem:[#allocation2 + $0x10] sm:$0xf] %vm301_vm0, %v1091_v4 }
  0x1f   : > { %v308_v5 = vld.sshfl [vmem:[#allocation1 + $0x8] sm:$0xff pattern:$0x75316420]  ;;  %v307_v6 = vld.sshfl [vmem:[#allocation1] sm:$0xff pattern:$0x75316420] }
  0x20   : > { %312 = vrot.lane.b32.xlu0 %v308_v5, %s1046_s18  ;;  %310 = vrot.lane.b32.xlu2 %v307_v6, %s1046_s18  ;;  %326 = vst [vmem:[#allocation1] ss:$2 sm:$0xff] %v286_v0 }
  0x22   : > { %v309_v7 = vld.sshfl [vmem:[#allocation1 + $0x10] sm:$0xff pattern:$0x75316420] }
  0x23   : > { %328 = vst [vmem:[#allocation1 + $0x10] ss:$2 sm:$0xff] %v287_v1 }
  0x27   : > { %v329_v8 = vld.sshfl [vmem:[#allocation1] sm:$0xff pattern:$0x75316420]  ;;  %v330_v9 = vld.sshfl [vmem:[#allocation1 + $0x8] sm:$0xff pattern:$0x75316420] }
  0x28   : > { %332 = vrot.lane.b32.xlu1 %v329_v8, %s1047_s19  ;;  %334 = vrot.lane.b32.xlu2 %v330_v9, %s1047_s19  ;;  %348 = vst [vmem:[#allocation1 + $0x1] ss:$2 sm:$0xff] %v286_v0 }
  0x2a   : > { %v331_v10 = vld.sshfl [vmem:[#allocation1 + $0x10] sm:$0xff pattern:$0x75316420] }
  0x2b   : > { %350 = vst [vmem:[#allocation1 + $0x11] ss:$2 sm:$0xff] %v287_v1 }
  0x2f   : > { %v352_v11 = vld.sshfl [vmem:[#allocation1 + $0x8] sm:$0xff pattern:$0x75316420]  ;;  %v351_v12 = vld.sshfl [vmem:[#allocation1] sm:$0xff pattern:$0x75316420] }
  0x30   : > { %356 = vrot.lane.b32.xlu1 %v352_v11, %s1048_s20  ;;  %354 = vrot.lane.b32.xlu0 %v351_v12, %s1048_s20  ;;  %369 = vst [vmem:[#allocation1] ss:$2 sm:$0xff] %v286_v0  ;;  %v476_v12 = vld [vmem:[%s1278_s1] sm:$0xff] }
  0x32   : > { %v353_v13 = vld.sshfl [vmem:[#allocation1 + $0x10] sm:$0xff pattern:$0x75316420] }
  0x33   : > { %371 = vst [vmem:[#allocation1 + $0x10] ss:$2 sm:$0xff] %v287_v1 }
  0x37   : > { %v373_v14 = vld.sshfl [vmem:[#allocation1 + $0x8] sm:$0xff pattern:$0x75316420]  ;;  %v372_v15 = vld.sshfl [vmem:[#allocation1] sm:$0xff pattern:$0x75316420] }
  0x38   : > { %377 = vrot.lane.b32.xlu1 %v373_v14, %s1049_s21  ;;  %375 = vrot.lane.b32.xlu0 %v372_v15, %s1049_s21  ;;  %391 = vst [vmem:[#allocation1 + $0x1] ss:$2 sm:$0xff] %v286_v0 }
  0x3a   : > { %v374_v16 = vld.sshfl [vmem:[#allocation1 + $0x10] sm:$0xff pattern:$0x75316420] }
  0x3b   : > { %393 = vst [vmem:[#allocation1 + $0x11] ss:$2 sm:$0xff] %v287_v1 }
  0x3f   : > { %v394_v17 = vld.sshfl [vmem:[#allocation1] sm:$0xff pattern:$0x75316420]  ;;  %v395_v18 = vld.sshfl [vmem:[#allocation1 + $0x8] sm:$0xff pattern:$0x75316420] }
  0x40   : > { %397 = vrot.lane.b32.xlu2 %v394_v17, %s1050_s22  ;;  %399 = vrot.lane.b32.xlu0 %v395_v18, %s1050_s22  ;;  %412 = vst [vmem:[#allocation1] ss:$2 sm:$0xff] %v286_v0 }
  0x42   : > { %v396_v19 = vld.sshfl [vmem:[#allocation1 + $0x10] sm:$0xff pattern:$0x75316420] }
  0x43   : > { %414 = vst [vmem:[#allocation1 + $0x10] ss:$2 sm:$0xff] %v287_v1 }
  0x47   : > { %v415_v20 = vld.sshfl [vmem:[#allocation1] sm:$0xff pattern:$0x75316420]  ;;  %v416_v21 = vld.sshfl [vmem:[#allocation1 + $0x8] sm:$0xff pattern:$0x75316420] }
  0x48   : > { %418 = vrot.lane.b32.xlu1 %v415_v20, %s1051_s23  ;;  %434 = vst [vmem:[#allocation1 + $0x1] ss:$2 sm:$0xff] %v286_v0 }
  0x4a   : > { %v417_v22 = vld.sshfl [vmem:[#allocation1 + $0x10] sm:$0xff pattern:$0x75316420] }
  0x4b   : > { %436 = vst [vmem:[#allocation1 + $0x11] ss:$2 sm:$0xff] %v287_v1  ;;  %422 = vrot.lane.b32.xlu2 %v417_v22, %s1051_s23  ;;  %v171_v22 = vlaneseq }
  0x4f   : > { %v437_v23 = vld.sshfl [vmem:[#allocation1] sm:$0xff pattern:$0x75316420]  ;;  %v438_v24 = vld.sshfl [vmem:[#allocation1 + $0x8] sm:$0xff pattern:$0x75316420] }
  0x50   : > { %420 = vrot.lane.b32.xlu1 %v416_v21, %s1051_s23  ;;  %455 = vst [vmem:[#allocation1] ss:$2 sm:$0xff] %v286_v0 }
  0x52   : > { %v439_v25 = vld.sshfl [vmem:[#allocation1 + $0x10] sm:$0xff pattern:$0x75316420] }
  0x53   : > { %457 = vst [vmem:[#allocation1 + $0x10] ss:$2 sm:$0xff] %v287_v1  ;;  %440 = vrot.lane.b32.xlu2 %v437_v23, %s1052_s24  ;;  %v1157_v23 = vand.u32 127, %v171_v22 }
  0x57   : > { %v458_v26 = vld.sshfl [vmem:[#allocation1] sm:$0xff pattern:$0x75316420]  ;;  %v459_v28 = vld.sshfl [vmem:[#allocation1 + $0x8] sm:$0xff pattern:$0x75316420] }
  0x58   : > { %379 = vrot.lane.b32.xlu1 %v374_v16, %s1049_s21  ;;  %461 = vrot.lane.b32.xlu0 %v458_v26, %s1053_s25  ;;  %v179_v26 = vshrl.u32 %v1157_v23, 16 }
  0x5a   : > { %v460_v27 = vld.sshfl [vmem:[#allocation1 + $0x10] sm:$0xff pattern:$0x75316420] }
  0x5b   : > { %442 = vrot.lane.b32.xlu2 %v438_v24, %s1052_s24  ;;  %v178_v24 = vand.u32 65535, %v1157_v23 }
  0x60   : > { %465 = vrot.lane.b32.xlu1 %v460_v27, %s1053_s25  ;;  %463 = vrot.lane.b32.xlu0 %v459_v28, %s1053_s25  ;;  %v182_v27 = vmul.u32 58254, %v178_v24 }
  0x63   : > { %401 = vrot.lane.b32.xlu2 %v396_v19, %s1050_s22 }
  0x68   : > { %358 = vrot.lane.b32.xlu1 %v353_v13, %s1048_s20  ;;  %444 = vrot.lane.b32.xlu0 %v439_v25, %s1052_s24  ;;  %v1161_v25 = vadd.s32 128, %v1157_v23 }
  0x6a   : > { %v207_v28 = vand.u32 65535, %v1161_v25 }
  0x6b   : > { %314 = vrot.lane.b32.xlu2 %v309_v7, %s1046_s18 }
  0x70   : > { %336 = vrot.lane.b32.xlu0 %v331_v10, %s1047_s19 }
  0x7a   : > { %v311_v29 = vpop.permute.xlu2 %310 }
  0x82   : > { %v1119_v30 = vpop.permute.xlu2 %334 }
  0x92   : > { %v313_v31 = vpop.permute.xlu0 %312 }
  0x93   : > { %v317_v32 = vsel %vm1281_vm1, %v311_v29, %v313_v31  ;;  %v208_v29 = vshrl.u32 %v1161_v25, 16 }
  0x94   : > { %322 = vst [vmem:[#allocation2] sm:$0xf0] %v317_v32  ;;  %v183_v32 = vmul.u32 14564, %v179_v26 }
  0x9a   : > { %v333_v33 = vpop.permute.xlu1 %332  ;;  %v398_v34 = vpop.permute.xlu2 %397 }
  0x9b   : > { %v339_v35 = vsel %vm1282_vm2, %v333_v33, %v1119_v30  ;;  %v477_v11 = vld [vmem:[#allocation2] sm:$0xff]  ;;  %v174_v33 = vadd.s32 256, %v1157_v23 }
  0x9c   : > { %344 = vst [vmem:[#allocation2 + $0x18] sm:$0xf] %v339_v35  ;;  %v210_v35 = vmul.u32 14564, %v207_v28 }
  0xa2   : > { %v357_v36 = vpop.permute.xlu1 %356  ;;  %v355_v37 = vpop.permute.xlu0 %354 }
  0xa3   : > { %v361_v38 = vsel %vm1283_vm3, %v355_v37, %v357_v36 }
  0xa4   : > { %366 = vst [vmem:[#allocation2 + $0x18] sm:$0xf0] %v361_v38  ;;  %v236_v38 = vand.u32 65535, %v174_v33 }
  0xa5   : > { %v423_v39 = vpop.permute.xlu2 %422 }
  0xa6   : > { %432 = vst.msk [vmem:[#allocation2 + $0x58] sm:$0xf] %vm301_vm0, %v423_v39 }
  0xaa   : > { %v378_v40 = vpop.permute.xlu1 %377  ;;  %v376_v41 = vpop.permute.xlu0 %375 }
  0xab   : > { %v382_v42 = vsel %vm381_vm4, %v376_v41, %v378_v40  ;;  %v480_v8 = vld [vmem:[#allocation2 + $0x18] sm:$0xff]  ;;  %v237_v41 = vshrl.u32 %v174_v33, 16 }
  0xac   : > { %387 = vst [vmem:[#allocation2 + $0x30] sm:$0xf] %v382_v42  ;;  %v240_v42 = vmul.u32 58254, %v236_v38 }
  0xad   : > { %v441_v43 = vpop.permute.xlu2 %440 }
  0xb2   : > { %v400_v44 = vpop.permute.xlu0 %399 }
  0xb3   : > { %v404_v45 = vsel %vm403_vm5, %v398_v34, %v400_v44  ;;  %v185_v34 = vshll.u32 %v182_v27, 16 }
  0xb4   : > { %409 = vst [vmem:[#allocation2 + $0x30] sm:$0xf0] %v404_v45  ;;  %v213_v45 = vmul.u32 58254, %v208_v29 }
  0xb5   : > { %v443_v46 = vpop.permute.xlu2 %442 }
  0xb6   : > { %v447_v47 = vsel %vm446_vm6, %v441_v43, %v443_v46  ;;  %v187_v43 = vshll.u32 %v183_v32, 16 }
  0xb7   : > { %452 = vst [vmem:[#allocation2 + $0x48] sm:$0xf0] %v447_v47  ;;  %v241_v47 = vmul.u32 14564, %v237_v41 }
  0xba   : > { %v419_v48 = vpop.permute.xlu1 %418 }
  0xbb   : > { %v483_v7 = vld [vmem:[#allocation2 + $0x30] sm:$0xff] }
  0xbd   : > { %v402_v49 = vpop.permute.xlu2 %401 }
  0xbe   : > { %v405_v50 = vsel %vm403_vm5, %v400_v44, %v402_v49  ;;  %411 = vst.msk [vmem:[#allocation2 + $0x40] sm:$0xf0] %vm324_vm7, %v402_v49  ;;  %v1055_v49 = vmov 0  }
  0xbf   : > { %410 = vst [vmem:[#allocation2 + $0x38] sm:$0xf0] %v405_v50 }
  0xc2   : > { %v421_v51 = vpop.permute.xlu1 %420 }
  0xc3   : > { %v425_v52 = vsel %vm424_vm8, %v419_v48, %v421_v51  ;;  %v426_v53 = vsel %vm424_vm8, %v421_v51, %v423_v39  ;;  %v243_v48 = vshll.u32 %v240_v42, 16  ;;  %v184_v51 = vmul.u32 58254, %v179_v26 }
  0xc4   : > { %430 = vst [vmem:[#allocation2 + $0x48] sm:$0xf] %v425_v52 }
  0xc5   : > { %431 = vst [vmem:[#allocation2 + $0x50] sm:$0xf] %v426_v53  ;;  %v315_v54 = vpop.permute.xlu2 %314  ;;  %v245_v53 = vshll.u32 %v241_v47, 16 }
  0xc6   : > { %v318_v55 = vsel %vm1281_vm1, %v313_v31, %v315_v54  ;;  %325 = vst.msk [vmem:[#allocation2 + $0x10] sm:$0xf0] %vm324_vm7, %v315_v54  ;;  %v181_v31 = vmul.u32 14564, %v178_v24 }
  0xc7   : > { %323 = vst [vmem:[#allocation2 + $0x8] sm:$0xf0] %v318_v55 }
  0xc8   : > { %vm189_vm13 = vc.u32 %v181_v31, %v185_v34  ;;  %v191_v44 = vadd.s32 %v185_v34, %v181_v31 }
  0xc9   : > { %v190_v52 = vsel %vm189_vm13, 1, %v1055_v49 }
  0xca   : > { %v380_v56 = vpop.permute.xlu1 %379  ;;  %v462_v57 = vpop.permute.xlu0 %461 }
  0xcb   : > { %v383_v58 = vsel %vm381_vm4, %v378_v40, %v380_v56  ;;  %389 = vst.msk [vmem:[#allocation2 + $0x40] sm:$0xf] %vm301_vm0, %v380_v56  ;;  %v486_v6 = vld [vmem:[#allocation2 + $0x48] sm:$0xff] }
  0xcc   : > { %388 = vst [vmem:[#allocation2 + $0x38] sm:$0xf] %v383_v58  ;;  %v192_v58 = vadd.s32 %v190_v52, %v184_v51 }
  0xcd   : > { %v479_v19 = vld [vmem:[#allocation2 + $0x10] sm:$0xff] }
  0xce   : > { %v478_v21 = vld [vmem:[#allocation2 + $0x8] sm:$0xff] }
  0xd2   : > { %v466_v60 = vpop.permute.xlu1 %465  ;;  %v464_v61 = vpop.permute.xlu0 %463  ;;  %v485_v17 = vld [vmem:[#allocation2 + $0x40] sm:$0xff] }
  0xd3   : > { %475 = vst.msk [vmem:[#allocation2 + $0x70] sm:$0xf] %vm301_vm0, %v466_v60  ;;  %v468_v62 = vsel %vm467_vm9, %v462_v57, %v464_v61  ;;  %v469_v63 = vsel %vm467_vm9, %v464_v61, %v466_v60  ;;  %v484_v15 = vld [vmem:[#allocation2 + $0x38] sm:$0xff]  ;;  %v242_v57 = vmul.u32 58254, %v237_v41 }
  0xd4   : > { %473 = vst [vmem:[#allocation2 + $0x60] sm:$0xf] %v468_v62 }
  0xd5   : > { %474 = vst [vmem:[#allocation2 + $0x68] sm:$0xf] %v469_v63 }
  0xda   : > { %v359_v0 = vpop.permute.xlu1 %358  ;;  %v445_v1 = vpop.permute.xlu0 %444  ;;  %v491_v14 = vld [vmem:[#allocation2 + $0x70] sm:$0xf] }
  0xdb   : > { %v362_v2 = vsel %vm1283_vm3, %v357_v36, %v359_v0  ;;  %368 = vst.msk [vmem:[#allocation2 + $0x28] sm:$0xf0] %vm324_vm7, %v359_v0  ;;  %v448_v3 = vsel %vm446_vm6, %v443_v46, %v445_v1  ;;  %v489_v4 = vld [vmem:[#allocation2 + $0x60] sm:$0xf]  ;;  %v212_v36 = vmul.u32 14564, %v208_v29  ;;  %v239_v46 = vmul.u32 14564, %v236_v38 }
  0xdc   : > { %367 = vst [vmem:[#allocation2 + $0x20] sm:$0xf0] %v362_v2  ;;  %1002 = vmatpush.msk.msra.mxu2 %vm496_vm10, %v489_v4  ;;  %v490_v5 = vld [vmem:[#allocation2 + $0x68] sm:$0xf] }
  0xdd   : > { %453 = vst [vmem:[#allocation2 + $0x50] sm:$0xf0] %v448_v3  ;;  %1004 = vmatpush.msk.msra.mxu1 %vm496_vm10, %v490_v5  ;;  %v216_v39 = vshll.u32 %v212_v36, 16  ;;  %vm247_vm15 = vc.u32 %v239_v46, %v243_v48  ;;  %v249_v54 = vadd.s32 %v243_v48, %v239_v46  ;;  %v217_v4 = vshrl.u32 %v212_v36, 16 }
  0xde   : > { %454 = vst.msk [vmem:[#allocation2 + $0x58] sm:$0xf0] %vm324_vm7, %v445_v1  ;;  %518 = vmatpush.msra.mxu2 %v486_v6  ;;  %v248_v60 = vsel %vm247_vm15, 1, %v1055_v49  ;;  %v186_v1 = vshrl.u32 %v182_v27, 16  ;;  %v244_v6 = vshrl.u32 %v240_v42, 16 }
  0xdf   : > { %vm251_vm7 = vc.u32 %v249_v54, %v245_v53  ;;  %v250_v0 = vadd.s32 %v248_v60, %v242_v57 }
  0xe0   : > { %519 = vmatpush.msra.mxu2 %v483_v7  ;;  %v252_v3 = vsel %vm251_vm7, 1, %v1055_v49 }
  0xe1   : > { %v254_v7 = vadd.s32 %v252_v3, %v250_v0 }
  0xe2   : > { %520 = vmatpush.msra.mxu2 %v480_v8  ;;  %v337_v9 = vpop.permute.xlu0 %336  ;;  %v188_v8 = vshrl.u32 %v183_v32, 16 }
  0xe3   : > { %v340_v10 = vsel %vm1282_vm2, %v1119_v30, %v337_v9  ;;  %346 = vst.msk [vmem:[#allocation2 + $0x28] sm:$0xf] %vm301_vm0, %v337_v9  ;;  %v211_v30 = vmul.u32 58254, %v207_v28  ;;  %vm193_vm0 = vc.u32 %v191_v44, %v187_v43 }
  0xe4   : > { %345 = vst [vmem:[#allocation2 + $0x20] sm:$0xf] %v340_v10  ;;  %521 = vmatpush.msra.mxu2 %v477_v11  ;;  %v487_v13 = vld [vmem:[#allocation2 + $0x50] sm:$0xff]  ;;  %v194_v61 = vsel %vm193_vm0, 1, %v1055_v49  ;;  %v246_v11 = vshrl.u32 %v241_v47, 16 }
  0xe5   : > { %538 = vmatpush.msra.mxu1 %v487_v13  ;;  %1003 = vmatmul.msk.f32.vlgmr.msra.gmra.mxu2 %vm492_vm11, %v476_v12  ;;  %v488_v16 = vld [vmem:[#allocation2 + $0x58] sm:$0xff]  ;;  %v214_v37 = vshll.u32 %v211_v30, 16  ;;  %v215_v62 = vshrl.u32 %v211_v30, 16  ;;  %v196_v2 = vadd.s32 %v194_v61, %v192_v58 }
  0xe6   : > { %1006 = vmatpush.msk.msrb.mxu2 %vm496_vm10, %v491_v14 }
  0xe7   : > { %539 = vmatpush.msra.mxu1 %v484_v15  ;;  %vm218_vm12 = vc.u32 %v210_v35, %v214_v37  ;;  %v220_v40 = vadd.s32 %v214_v37, %v210_v35  ;;  %v197_v9 = vadd.s32 %v196_v2, %v186_v1 }
  0xe8   : > { %558 = vmatpush.msrb.mxu2 %v488_v16  ;;  %v219_v50 = vsel %vm218_vm12, 1, %v1055_v49 }
  0xe9   : > { %vm222_vm14 = vc.u32 %v220_v40, %v216_v39  ;;  %v221_v55 = vadd.s32 %v219_v50, %v213_v45  ;;  %v198_v13 = vadd.s32 %v197_v9, %v188_v8 }
  0xea   : > { %559 = vmatpush.msrb.mxu2 %v485_v17  ;;  %v482_v18 = vld [vmem:[#allocation2 + $0x28] sm:$0xff]  ;;  %v223_v56 = vsel %vm222_vm14, 1, %v1055_v49 }
  0xeb   : > { %v481_v20 = vld [vmem:[#allocation2 + $0x20] sm:$0xff]  ;;  %v225_v63 = vadd.s32 %v223_v56, %v221_v55  ;;  %v199_v16 = vshrl.u32 %v198_v13, 4 }
  0xec   : > { %560 = vmatpush.msrb.mxu2 %v482_v18  ;;  %540 = vmatpush.msra.mxu1 %v481_v20 }
  0xed   : > { %v226_v5 = vadd.s32 %v225_v63, %v215_v62 }
  0xee   : > { %561 = vmatpush.msrb.mxu2 %v479_v19  ;;  %541 = vmatpush.msra.mxu1 %v478_v21  ;;  %v200_v19 = vmul.u32 18, %v199_v16 }
  0xef   : > { %1007 = vmatmul.msk.f32.vlgmr.msrb.gmra.mxu2 %vm492_vm11, %v476_v12  ;;  %1005 = vmatmul.msk.f32.vlgmr.msra.gmra.mxu1 %vm492_vm11, %v476_v12  ;;  %v227_v10 = vadd.s32 %v226_v5, %v217_v4  ;;  %v255_v12 = vadd.s32 %v254_v7, %v244_v6 }
  0xf0   : > { %v201_v22 = vsub.s32 %v1157_v23, %v200_v19 }
  0xf1   : > { %v228_v14 = vshrl.u32 %v227_v10, 4  ;;  %v256_v15 = vadd.s32 %v255_v12, %v246_v11 }
  0xf2   : > { %vm262_vm12 = vcmp.ne.s32.totalorder %v201_v22, 0  ;;  %vm265_vm13 = vcmp.lt.s32.totalorder %v201_v22, 0  ;;  %v271_v27 = vadd.s32 18, %v201_v22 }
  0xf3   : > { %v229_v17 = vmul.u32 18, %v228_v14  ;;  %v257_v18 = vshrl.u32 %v256_v15, 4  ;;  %vm268_vm15 = vmand %vm265_vm13, %vm262_vm12  ;;  %vm610_vm12 = vcmask 572416   ;;  %vm630_vm13 = vcmask 1047704  }
  0xf4   : > { %v274_v30 = vsel %vm268_vm15, %v271_v27, %v201_v22  ;;  %611 = vst.msk [vmem:[#allocation4 + $0x10] sm:$0xff] %vm610_vm12, %v1054_v59  ;;  %vm633_vm15 = vcmask 416768  }
  0xf5   : > { %v230_v20 = vsub.s32 %v1161_v25, %v229_v17  ;;  %v258_v21 = vmul.u32 18, %v257_v18  ;;  %vm277_vm3 = vcmp.lt.s32.totalorder %v274_v30, 16 }
  0xf6   : > { %v1173_v32 = vsel %vm277_vm3, 1.0, %v1054_v59 }
  0xf7   : > { %vm263_vm10 = vcmp.ne.s32.totalorder %v230_v20, 0  ;;  %vm266_vm11 = vcmp.lt.s32.totalorder %v230_v20, 0  ;;  %v259_v24 = vsub.s32 %v174_v33, %v258_v21  ;;  %v272_v26 = vadd.s32 18, %v230_v20 }
  0xf8   : > { %vm269_vm14 = vmand %vm266_vm11, %vm263_vm10  ;;  %vm570_vm11 = vcmask 261120  }
  0xf9   : > { %vm264_vm0 = vcmp.ne.s32.totalorder %v259_v24, 0  ;;  %vm267_vm7 = vcmp.lt.s32.totalorder %v259_v24, 0  ;;  %v275_v28 = vsel %vm269_vm14, %v272_v26, %v230_v20  ;;  %v273_v29 = vadd.s32 18, %v259_v24 }
  0xfa   : > { %vm270_vm1 = vmand %vm267_vm7, %vm264_vm0  ;;  %vm278_vm2 = vcmp.lt.s32.totalorder %v275_v28, 16  ;;  %vm624_vm14 = vcmask 154624   ;;  %vm1284_vm0 = vcmask 900096   ;;  %vm829_vm7 = vcmask 588800  }
  0xfb   : > { %v276_v31 = vsel %vm270_vm1, %v273_v29, %v259_v24  ;;  %v1170_v23 = vsel %vm278_vm2, 1.0, %v1054_v59 }
  0xfc   : > { %vm279_vm10 = vcmp.lt.s32.totalorder %v276_v31, 16 }
  0xfd   : > { %v1178_v36 = vsel %vm279_vm10, 1.0, %v1054_v59 }
 0x168   : > { %v523_v25 = vpop.f32.mrf.mxu2 }
 0x169   : > { %v566_v35 = vmul.f32 %v1173_v32, %v523_v25 }
 0x16b   : > { %v576_v40 = vmul.f32 %v566_v35, %v566_v35 }
 0x16c   : > { %v543_v33 = vpop.f32.mrf.mxu1 }
 0x16d   : > { %v567_v34 = vmul.f32 %v1170_v23, %v543_v33 }
 0x16f   : > { %v577_v37 = vmul.f32 %v567_v34, %v567_v34  ;;  %v569_v41 = vadd.f32 %v567_v34, %v566_v35 }
 0x171   : > { %v579_v45 = vadd.f32 %v577_v37, %v576_v40 }
 0x172   : > { %v563_v38 = vpop.f32.mrf.mxu2 }
 0x173   : > { %v568_v39 = vmul.f32 %v1178_v36, %v563_v38 }
 0x175   : > { %v578_v42 = vmul.f32 %v568_v39, %v568_v39  ;;  %v571_v43 = vsel %vm570_vm11, %v568_v39, 0.0 }
 0x176   : > { %v572_v44 = vadd.f32 %v571_v43, %v569_v41 }
 0x177   : > { %v580_v46 = vsel %vm570_vm11, %v578_v42, 0.0 }
 0x178   : > { %573 = vadd.xlane.f32.xlu0 %v572_v44  ;;  %v581_v47 = vadd.f32 %v580_v46, %v579_v45 }
 0x17a   : > { %582 = vadd.xlane.f32.xlu1 %v581_v47 }
 0x1eb   : > { %v574_v48 = vpop.xlane.xlu0 %573 }
 0x1ec   : > { %v575_v49 = vmul.f32 0.00390625, %v574_v48 }
 0x1ed   : > { %v583_v50 = vpop.xlane.xlu1 %582 }
 0x1ee   : > { %v584_v51 = vmul.f32 0.00390625, %v583_v50  ;;  %v585_v52 = vmul.f32 %v575_v49, %v575_v49  ;;  %v588_v63 = vsub.f32 %v523_v25, %v575_v49  ;;  %v589_v3 = vsub.f32 %v543_v33, %v575_v49 }
 0x1ef   : > { %v590_v7 = vsub.f32 %v563_v38, %v575_v49 }
 0x1f0   : > { %v586_v53 = vsub.f32 %v584_v51, %v585_v52 }
 0x1f2   : > { %v587_v54 = vmax.f32 %v586_v53, 0.0 }
 0x1f4   : > { %v591_v55 = vadd.f32 1e-05, %v587_v54 }
 0x1f6   : > { %1034 = vrsqrt.f32 %v591_v55  ;;  %vm598_vm2 = vweird.f32 %v591_v55 }
 0x1fc   : > { %v1035_v56 = vpop.eup %1034 }
 0x1fd   : > { %v593_v57 = vmul.f32 %v1035_v56, %v591_v55  ;;  %vm599_vm1 = vweird.f32 %v1035_v56 }
 0x1fe   : > { %vm600_vm3 = vmor %vm598_vm2, %vm599_vm1 }
 0x1ff   : > { %v594_v58 = vmul.f32 %v1035_v56, %v593_v57 }
 0x201   : > { %v595_v60 = vmul.f32 0.5, %v594_v58  ;;  %v801_v58 = vld [vmem:[%s1279_s2] sm:$0xff] }
 0x203   : > { %v596_v61 = vsub.f32 1.5, %v595_v60 }
 0x205   : > { %v597_v62 = vmul.f32 %v1035_v56, %v596_v61 }
 0x207   : > { %v601_v0 = vsel %vm600_vm3, %v1035_v56, %v597_v62 }
 0x208   : > { %v602_v1 = vmul.f32 %v601_v0, %v588_v63  ;;  %v603_v5 = vmul.f32 %v601_v0, %v589_v3  ;;  %v604_v9 = vmul.f32 %v601_v0, %v590_v7 }
 0x20a   : > { %v605_v2 = vmax.f32 %v602_v1, 0.0  ;;  %v606_v6 = vmax.f32 %v603_v5, 0.0  ;;  %v607_v10 = vmax.f32 %v604_v9, 0.0 }
 0x20c   : > { %v612_v4 = vmul.f32 %v1173_v32, %v605_v2  ;;  %v613_v8 = vmul.f32 %v1170_v23, %v606_v6  ;;  %v614_v11 = vmul.f32 %v1178_v36, %v607_v10 }
 0x20e   : > { %618 = vrot.lane.b32.xlu2 %v612_v4, %s1056_s28 }
 0x216   : > { %620 = vrot.lane.b32.xlu2 %v613_v8, %s1056_s28 }
 0x21e   : > { %622 = vrot.lane.b32.xlu2 %v614_v11, %s1056_s28 }
 0x268   : > { %v619_v12 = vpop.permute.xlu2 %618 }
 0x269   : > { %631 = vst.msk [vmem:[#allocation4] sm:$0xff] %vm630_vm13, %v619_v12 }
 0x270   : > { %v621_v13 = vpop.permute.xlu2 %620  ;;  %v1187_v14 = vld [vmem:[#allocation4] sm:$0xff] }
 0x271   : > { %v1189_v15 = vsel %vm624_vm14, %v619_v12, %v621_v13  ;;  %787 = vrot.lane.b32.xlu2 %v1187_v14, %s1053_s25  ;;  %747 = vrot.lane.b32.xlu1 %v1187_v14, %s1051_s23 }
 0x272   : > { %769 = vrot.lane.b32.xlu0 %v1189_v15, %s1052_s24 }
 0x278   : > { %v623_v59 = vpop.permute.xlu2 %622 }
 0x279   : > { %v626_v16 = vsel %vm624_vm14, %v621_v13, %v623_v59  ;;  %767 = vrot.lane.b32.xlu2 %v1187_v14, %s1052_s24  ;;  %707 = vrot.lane.b32.xlu1 %v1187_v14, %s1049_s21 }
 0x27a   : > { %634 = vst.msk [vmem:[#allocation4 + $0x10] sm:$0xff] %vm633_vm15, %v626_v16  ;;  %729 = vrot.lane.b32.xlu0 %v1189_v15, %s1050_s22 }
 0x281   : > { %727 = vrot.lane.b32.xlu2 %v1187_v14, %s1050_s22  ;;  %687 = vrot.lane.b32.xlu1 %v1187_v14, %s1048_s20  ;;  %v783_v17 = vld [vmem:[#allocation4 + $0x10] sm:$0xff] }
 0x282   : > { %709 = vrot.lane.b32.xlu0 %v1189_v15, %s1049_s21  ;;  %640 = vst.msk [vmem:[#allocation3 + $0x10] sm:$0xff] %vm570_vm11, %v783_v17 }
 0x289   : > { %667 = vrot.lane.b32.xlu1 %v1187_v14, %s1047_s19  ;;  %789 = vrot.lane.b32.xlu2 %v1189_v15, %s1053_s25  ;;  %v804_v7 = vld [vmem:[#allocation3 + $0x10] sm:$0xff] }
 0x28a   : > { %689 = vrot.lane.b32.xlu0 %v1189_v15, %s1048_s20 }
 0x291   : > { %647 = vrot.lane.b32.xlu1 %v1187_v14, %s1046_s18  ;;  %749 = vrot.lane.b32.xlu2 %v1189_v15, %s1051_s23 }
 0x292   : > { %669 = vrot.lane.b32.xlu0 %v1189_v15, %s1047_s19 }
 0x299   : > { %791 = vrot.lane.b32.xlu2 %v783_v17, %s1053_s25  ;;  %691 = vrot.lane.b32.xlu1 %v783_v17, %s1048_s20 }
 0x29a   : > { %649 = vrot.lane.b32.xlu0 %v1189_v15, %s1046_s18 }
 0x2a1   : > { %771 = vrot.lane.b32.xlu2 %v783_v17, %s1052_s24 }
 0x2a2   : > { %671 = vrot.lane.b32.xlu0 %v783_v17, %s1047_s19 }
 0x2a9   : > { %751 = vrot.lane.b32.xlu2 %v783_v17, %s1051_s23 }
 0x2b1   : > { %731 = vrot.lane.b32.xlu2 %v783_v17, %s1050_s22 }
 0x2b9   : > { %711 = vrot.lane.b32.xlu2 %v783_v17, %s1049_s21 }
 0x2c1   : > { %651 = vrot.lane.b32.xlu2 %v783_v17, %s1046_s18 }
 0x2cb   : > { %v788_v18 = vpop.permute.xlu2 %787 }
 0x2d3   : > { %v768_v19 = vpop.permute.xlu2 %767 }
 0x2db   : > { %v728_v20 = vpop.permute.xlu2 %727 }
 0x2e3   : > { %v748_v21 = vpop.permute.xlu1 %747  ;;  %v790_v22 = vpop.permute.xlu2 %789 }
 0x2e4   : > { %v793_v24 = vsel %vm467_vm9, %v788_v18, %v790_v22  ;;  %v770_v26 = vpop.permute.xlu0 %769 }
 0x2e5   : > { %v773_v27 = vsel %vm446_vm6, %v768_v19, %v770_v26  ;;  %840 = vmatpush.msra.mxu3 %v793_v24 }
 0x2e7   : > { %841 = vmatpush.msra.mxu3 %v773_v27 }
 0x2eb   : > { %v708_v28 = vpop.permute.xlu1 %707  ;;  %v750_v29 = vpop.permute.xlu2 %749 }
 0x2ec   : > { %v753_v30 = vsel %vm424_vm8, %v748_v21, %v750_v29  ;;  %v730_v25 = vpop.permute.xlu0 %729 }
 0x2ed   : > { %v733_v31 = vsel %vm403_vm5, %v728_v20, %v730_v25  ;;  %842 = vmatpush.msra.mxu3 %v753_v30 }
 0x2ef   : > { %843 = vmatpush.msra.mxu3 %v733_v31 }
 0x2f3   : > { %v688_v33 = vpop.permute.xlu1 %687  ;;  %v792_v34 = vpop.permute.xlu2 %791 }
 0x2f4   : > { %v794_v35 = vsel %vm467_vm9, %v790_v22, %v792_v34  ;;  %800 = vst.msk [vmem:[#allocation3 + $0xd0] sm:$0xff] %vm570_vm11, %v792_v34  ;;  %v710_v37 = vpop.permute.xlu0 %709  ;;  %vm1285_vm9 = vcmask 1031168  }
 0x2f5   : > { %v713_v38 = vsel %vm381_vm4, %v708_v28, %v710_v37  ;;  %860 = vmatpush.msra.mxu0 %v794_v35 }
 0x2f6   : > { %844 = vmatpush.msra.mxu3 %v713_v38 }
 0x2fb   : > { %v668_v39 = vpop.permute.xlu1 %667  ;;  %v772_v40 = vpop.permute.xlu2 %771  ;;  %v828_v41 = vld [vmem:[#allocation3 + $0xd0] sm:$0xff] }
 0x2fc   : > { %v774_v42 = vsel %vm446_vm6, %v770_v26, %v772_v40  ;;  %780 = vst.msk [vmem:[#allocation3 + $0xb8] sm:$0xff] %vm570_vm11, %v772_v40  ;;  %880 = vmatpush.msrb.mxu1 %v828_v41  ;;  %v690_v43 = vpop.permute.xlu0 %689  ;;  %vm1286_vm6 = vmmov %vm1284_vm0 }
 0x2fd   : > { %v693_v44 = vsel %vm1284_vm0, %v688_v33, %v690_v43  ;;  %861 = vmatpush.msra.mxu0 %v774_v42 }
 0x2fe   : > { %845 = vmatpush.msra.mxu3 %v693_v44 }
 0x303   : > { %v648_v45 = vpop.permute.xlu1 %647  ;;  %v752_v46 = vpop.permute.xlu2 %751  ;;  %v825_v47 = vld [vmem:[#allocation3 + $0xb8] sm:$0xff] }
 0x304   : > { %v754_v48 = vsel %vm424_vm8, %v750_v29, %v752_v46  ;;  %760 = vst.msk [vmem:[#allocation3 + $0xa0] sm:$0xff] %vm570_vm11, %v752_v46  ;;  %881 = vmatpush.msrb.mxu1 %v825_v47  ;;  %v670_v49 = vpop.permute.xlu0 %669  ;;  %vm1287_vm8 = vcmask 1039360  }
 0x305   : > { %v673_v50 = vsel %vm1285_vm9, %v668_v39, %v670_v49  ;;  %862 = vmatpush.msra.mxu0 %v754_v48  ;;  %vm1289_vm10 = vmmov %vm1287_vm8 }
 0x306   : > { %846 = vmatpush.msra.mxu3 %v673_v50 }
 0x30b   : > { %v692_v51 = vpop.permute.xlu1 %691  ;;  %v732_v52 = vpop.permute.xlu2 %731  ;;  %v822_v53 = vld [vmem:[#allocation3 + $0xa0] sm:$0xff] }
 0x30c   : > { %v694_v54 = vsel %vm1286_vm6, %v690_v43, %v692_v51  ;;  %700 = vst.msk [vmem:[#allocation3 + $0x58] sm:$0xff] %vm570_vm11, %v692_v51  ;;  %v734_v55 = vsel %vm403_vm5, %v730_v25, %v732_v52  ;;  %882 = vmatpush.msrb.mxu1 %v822_v53  ;;  %v650_v56 = vpop.permute.xlu0 %649  ;;  %vm1288_vm5 = vmmov %vm1285_vm9 }
 0x30d   : > { %v653_v57 = vsel %vm1287_vm8, %v648_v45, %v650_v56  ;;  %863 = vmatpush.msra.mxu0 %v734_v55  ;;  %740 = vst.msk [vmem:[#allocation3 + $0x88] sm:$0xff] %vm570_vm11, %v732_v52 }
 0x30e   : > { %847 = vmatpush.msra.mxu3 %v653_v57 }
 0x310   : > { %848 = vmatpush.msra.mxu3 %v1187_v14 }
 0x311   : > { %1008 = vmatmul.msk.f32.vlgmr.msra.gmra.mxu3 %vm829_vm7, %v801_v58 }
 0x313   : > { %v712_v60 = vpop.permute.xlu2 %711  ;;  %v813_v4 = vld [vmem:[#allocation3 + $0x58] sm:$0xff] }
 0x314   : > { %v714_v61 = vsel %vm381_vm4, %v710_v37, %v712_v60  ;;  %720 = vst.msk [vmem:[#allocation3 + $0x70] sm:$0xff] %vm570_vm11, %v712_v60  ;;  %v672_v62 = vpop.permute.xlu0 %671  ;;  %v819_v0 = vld [vmem:[#allocation3 + $0x88] sm:$0xff] }
 0x315   : > { %v674_v63 = vsel %vm1288_vm5, %v670_v49, %v672_v62  ;;  %864 = vmatpush.msra.mxu0 %v714_v61  ;;  %883 = vmatpush.msrb.mxu1 %v819_v0  ;;  %680 = vst.msk [vmem:[#allocation3 + $0x40] sm:$0xff] %vm570_vm11, %v672_v62 }
 0x317   : > { %865 = vmatpush.msra.mxu0 %v694_v54 }
 0x319   : > { %866 = vmatpush.msra.mxu0 %v674_v63 }
 0x31b   : > { %v652_v1 = vpop.permute.xlu2 %651  ;;  %v816_v2 = vld [vmem:[#allocation3 + $0x70] sm:$0xff] }
 0x31c   : > { %v654_v3 = vsel %vm1289_vm10, %v650_v56, %v652_v1  ;;  %660 = vst.msk [vmem:[#allocation3 + $0x28] sm:$0xff] %vm570_vm11, %v652_v1  ;;  %884 = vmatpush.msrb.mxu1 %v816_v2  ;;  %v810_v5 = vld [vmem:[#allocation3 + $0x40] sm:$0xff] }
 0x31d   : > { %867 = vmatpush.msra.mxu0 %v654_v3 }
 0x31e   : > { %885 = vmatpush.msrb.mxu1 %v813_v4 }
 0x31f   : > { %868 = vmatpush.msra.mxu0 %v1189_v15 }
 0x320   : > { %886 = vmatpush.msrb.mxu1 %v810_v5  ;;  %1009 = vmatmul.msk.f32.vlgmr.msra.gmra.mxu0 %vm829_vm7, %v801_v58 }
 0x323   : > { %v807_v6 = vld [vmem:[#allocation3 + $0x28] sm:$0xff] }
 0x324   : > { %887 = vmatpush.msrb.mxu1 %v807_v6 }
 0x326   : > { %888 = vmatpush.msrb.mxu1 %v804_v7 }
 0x327   : > { %1010 = vmatmul.msk.f32.vlgmr.msrb.gmra.mxu1 %vm829_vm7, %v801_v58 }
 0x394   : > { %v850_v8 = vpop.f32.mrf.mxu3 }
 0x395   : > { %v893_v10 = vmul.f32 %v1173_v32, %v850_v8 }
 0x397   : > { %v902_v12 = vmul.f32 %v893_v10, %v893_v10 }
 0x39d   : > { %v870_v9 = vpop.f32.mrf.mxu0 }
 0x39e   : > { %v894_v11 = vmul.f32 %v1170_v23, %v870_v9 }
 0x3a0   : > { %v903_v13 = vmul.f32 %v894_v11, %v894_v11  ;;  %v896_v14 = vadd.f32 %v894_v11, %v893_v10 }
 0x3a2   : > { %v905_v16 = vadd.f32 %v903_v13, %v902_v12 }
 0x3a4   : > { %v890_v59 = vpop.f32.mrf.mxu1 }
 0x3a5   : > { %v895_v15 = vmul.f32 %v1178_v36, %v890_v59 }
 0x3a7   : > { %v904_v17 = vmul.f32 %v895_v15, %v895_v15  ;;  %v897_v18 = vsel %vm570_vm11, %v895_v15, 0.0 }
 0x3a8   : > { %v898_v19 = vadd.f32 %v897_v18, %v896_v14 }
 0x3a9   : > { %v906_v20 = vsel %vm570_vm11, %v904_v17, 0.0 }
 0x3aa   : > { %899 = vadd.xlane.f32.xlu1 %v898_v19  ;;  %v907_v21 = vadd.f32 %v906_v20, %v905_v16 }
 0x3ac   : > { %908 = vadd.xlane.f32.xlu0 %v907_v21 }
 0x41d   : > { %v900_v32 = vpop.xlane.xlu1 %899 }
 0x41e   : > { %v901_v22 = vmul.f32 0.00390625, %v900_v32 }
 0x41f   : > { %v909_v23 = vpop.xlane.xlu0 %908 }
 0x420   : > { %v910_v24 = vmul.f32 0.00390625, %v909_v23  ;;  %v911_v26 = vmul.f32 %v901_v22, %v901_v22  ;;  %v914_v35 = vsub.f32 %v850_v8, %v901_v22  ;;  %v915_v37 = vsub.f32 %v870_v9, %v901_v22 }
 0x421   : > { %v916_v38 = vsub.f32 %v890_v59, %v901_v22 }
 0x422   : > { %v912_v27 = vsub.f32 %v910_v24, %v911_v26 }
 0x424   : > { %v913_v28 = vmax.f32 %v912_v27, 0.0 }
 0x426   : > { %v917_v29 = vadd.f32 1e-05, %v913_v28 }
 0x428   : > { %1036 = vrsqrt.f32 %v917_v29  ;;  %vm924_vm1 = vweird.f32 %v917_v29 }
 0x42e   : > { %v1037_v36 = vpop.eup %1036 }
 0x42f   : > { %v919_v30 = vmul.f32 %v1037_v36, %v917_v29  ;;  %vm925_vm4 = vweird.f32 %v1037_v36 }
 0x430   : > { %vm926_vm2 = vmor %vm924_vm1, %vm925_vm4 }
 0x431   : > { %v920_v25 = vmul.f32 %v1037_v36, %v919_v30 }
 0x433   : > { %v921_v31 = vmul.f32 0.5, %v920_v25 }
 0x435   : > { %v922_v33 = vsub.f32 1.5, %v921_v31 }
 0x437   : > { %v923_v34 = vmul.f32 %v1037_v36, %v922_v33 }
 0x439   : > { %v927_v39 = vsel %vm926_vm2, %v1037_v36, %v923_v34 }
 0x43a   : > { %v928_v40 = vmul.f32 %v927_v39, %v914_v35  ;;  %v929_v41 = vmul.f32 %v927_v39, %v915_v37  ;;  %v930_v42 = vmul.f32 %v927_v39, %v916_v38 }
 0x43c   : > { %v931_v43 = vmax.f32 %v928_v40, 0.0  ;;  %v932_v44 = vmax.f32 %v929_v41, 0.0  ;;  %v933_v45 = vmax.f32 %v930_v42, 0.0 }
 0x43e   : > { %934 = vst [vmem:[%s170_s7] sm:$0xff] %v931_v43 }
 0x43f   : > { %935 = vst [vmem:[%s170_s7 + $0x8] sm:$0xff] %v932_v44 }
 0x440   : > { %936 = vst.msk [vmem:[%s170_s7 + $0x10] sm:$0xff] %vm570_vm11, %v933_v45 }
 0x441 PF: > { %s13_s12 = sadd.s32 1, %s1044_s12  }
 0x442   : > { %p10_p4 = scmp.ge.s32.totalorder %s13_s12, 4  }
 0x444   :  { %12 = sbr.rel (!%p10_p4) target bundleno = 1 (0x1), region = 75 }

</bundles_post_ra>
